<compile_context>
chip_gen: v6e
topology: v6e:2x2x1
jax: 0.10.0
libtpu: 0.0.40
codegen_flags: <defaults>
</compile_context>

<pallas_src>
import functools

import numpy as np
import jax
import jax.numpy as jnp
from jax.experimental import pallas as pl
from jax.experimental.pallas import tpu as pltpu


def _fold_kernel(inv_ref, x_ref, o_ref, acc_ref, *, stride):
    # inv_ref: (T, 1)      f32  reciprocal overlap counts (shared across steps)
    # x_ref:   (P, N, K, F)     unfolded blocks for P (batch*channel) planes
    # o_ref:   (P, T, F)        folded output planes
    # acc_ref: (P, T, F)   f32  scratch accumulator
    _, n_blocks, block_size, _ = x_ref.shape

    acc_ref[...] = jnp.zeros_like(acc_ref)
    # Overlap-add: block n lands at time offset n*stride (static -> unrolled,
    # all slice starts are compile-time constants).
    for n in range(n_blocks):
        acc_ref[:, pl.ds(n * stride, block_size), :] += (
            x_ref[:, n, :, :].astype(jnp.float32))

    # Normalize by the per-time overlap count: broadcast (1, T, 1) over
    # (P, T, F) and fuse the multiply into the final (lane-dense) store.
    o_ref[...] = (acc_ref[...] * inv_ref[...][None, :, :]).astype(o_ref.dtype)


def _pick_planes_per_step(num_planes, bytes_per_plane, vmem_cap=20 << 20):
    """Largest divisor of num_planes fitting the VMEM budget, preferring >=2 grid steps."""
    divisors = [d for d in range(1, num_planes + 1) if num_planes % d == 0]
    fitting = [d for d in divisors if d * bytes_per_plane <= vmem_cap] or [1]
    multi = [d for d in fitting if num_planes // d >= 2]  # keep both TCs busy
    return max(multi) if multi else max(fitting)


def fold_spectrogram(x: jax.Array, *, block_size: int, stride: int) -> jax.Array:
    """x: (B, C, num_blocks, block_size, F) -> (B, C, T, F)."""
    B, C, N, K, F = x.shape
    assert K == block_size
    T = (N - 1) * stride + block_size
    BC = B * C

    # All of the PyTorch reshape/permute plumbing reduces to this plane view
    # (pure metadata reshape, contiguous row-major order is preserved).
    x_planes = x.reshape(BC, N, K, F)

    # Per-time overlap count == PyTorch's fold(unfold(ones)) divisor (constant
    # over batch/channel/frequency).  Precompute its reciprocal on the host so
    # the kernel needs no EUP work (and matches PyTorch's exact division).
    t_idx = np.arange(T)
    n_idx = np.arange(N)
    cover = (t_idx[None, :] >= n_idx[:, None] * stride) & (
        t_idx[None, :] < n_idx[:, None] * stride + block_size)
    count = cover.sum(axis=0).astype(np.float32)            # (T,), >= 1 when stride <= K
    inv_count = jnp.asarray(1.0 / count).reshape(T, 1)

    itemsize = np.dtype(x.dtype).itemsize
    # double-buffered input + output blocks, plus the f32 scratch accumulator
    bytes_per_plane = (2 * N * K * F + 2 * T * F) * itemsize + T * F * 4
    P = _pick_planes_per_step(BC, bytes_per_plane)

    out_planes = pl.pallas_call(
        functools.partial(_fold_kernel, stride=stride),
        out_shape=jax.ShapeDtypeStruct((BC, T, F), x.dtype),
        grid=(BC // P,),
        in_specs=[
            # reciprocal counts: same block every step (fetched once)
            pl.BlockSpec((T, 1), lambda i: (0, 0)),
            # P full (N, K, F) planes per step
            pl.BlockSpec((P, N, K, F), lambda i: (i, 0, 0, 0)),
        ],
        out_specs=pl.BlockSpec((P, T, F), lambda i: (i, 0, 0)),
        scratch_shapes=[pltpu.VMEM((P, T, F), jnp.float32)],
        compiler_params=pltpu.CompilerParams(
            dimension_semantics=("parallel",)),
    )(inv_count, x_planes)

    return out_planes.reshape(B, C, T, F)


if __name__ == "__main__":
    B, C = 2, 4
    num_blocks, block_size, stride, F = 6, 8, 4, 128

    key = jax.random.PRNGKey(0)
    x = jax.random.normal(key, (B, C, num_blocks, block_size, F),
                          dtype=jnp.float32)

    y = fold_spectrogram(x, block_size=block_size, stride=stride)
    y = jax.block_until_ready(y)

    # Pure-JAX reference: overlap-add then divide by the overlap count.
    T = (num_blocks - 1) * stride + block_size
    ref = jnp.zeros((B, C, T, F), jnp.float32)
    cnt = jnp.zeros((T,), jnp.float32)
    for n in range(num_blocks):
        ref = ref.at[:, :, n * stride:n * stride + block_size, :].add(x[:, :, n])
        cnt = cnt.at[n * stride:n * stride + block_size].add(1.0)
    ref = ref / cnt[None, None, :, None]

    assert y.shape == (B, C, T, F)
    assert jnp.allclose(y, ref, atol=1e-5, rtol=1e-5)
    print("KERNEL_OK")
</pallas_src>

<mosaic_0001>
module attributes {stable_mosaic.version = 11 : i64} {
  func.func @_fold_kernel(%arg0: i32, %arg1: memref<28x1xf32, #tpu.memory_space<vmem>>, %arg2: memref<4x6x8x128xf32, #tpu.memory_space<vmem>>, %arg3: memref<4x28x128xf32, #tpu.memory_space<vmem>>, %arg4: memref<4x28x128xf32, #tpu.memory_space<vmem>>) attributes {dimension_semantics = [#tpu.dimension_semantics<parallel>], iteration_bounds = array<i64: 2>, scalar_prefetch = 0 : i64, scratch_operands = 1 : i64, tpu.core_type = #tpu.core_type<tc>, window_params = [{pipeline_mode = #tpu.pipeline_mode<synchronous>, transform_indices = @transform_0, window_bounds = array<i64: 28, 1>}, {transform_indices = @transform_1, window_bounds = array<i64: 4, 6, 8, 128>}, {transform_indices = @transform_2, window_bounds = array<i64: 4, 28, 128>}]} {
    %cst = arith.constant 0.000000e+00 : f32
    %0 = vector.broadcast %cst : f32 to vector<4x28x128xf32>
    %c0 = arith.constant 0 : index
    %c0_0 = arith.constant 0 : index
    %c0_1 = arith.constant 0 : index
    %1 = vector.load %arg4[%c0, %c0_0, %c0_1] : memref<4x28x128xf32, #tpu.memory_space<vmem>>, vector<4x28x128xf32>
    tpu.vector_store %arg4[%c0, %c0_0, %c0_1], %0 {strides = array<i32>} : memref<4x28x128xf32, #tpu.memory_space<vmem>>, vector<4x28x128xf32>,
    %c0_2 = arith.constant 0 : index
    %c0_3 = arith.constant 0 : index
    %c0_4 = arith.constant 0 : index
    %2 = vector.load %arg4[%c0_2, %c0_3, %c0_4] : memref<4x28x128xf32, #tpu.memory_space<vmem>>, vector<4x8x128xf32>
    %c0_5 = arith.constant 0 : index
    %c0_6 = arith.constant 0 : index
    %c0_7 = arith.constant 0 : index
    %c0_8 = arith.constant 0 : index
    %3 = vector.load %arg2[%c0_5, %c0_6, %c0_7, %c0_8] : memref<4x6x8x128xf32, #tpu.memory_space<vmem>>, vector<4x1x8x128xf32>
    %4 = vector.shape_cast %3 : vector<4x1x8x128xf32> to vector<4x8x128xf32>
    %5 = arith.addf %2, %4 : vector<4x8x128xf32>
    %c0_9 = arith.constant 0 : index
    %c0_10 = arith.constant 0 : index
    %c0_11 = arith.constant 0 : index
    %6 = vector.load %arg4[%c0_9, %c0_10, %c0_11] : memref<4x28x128xf32, #tpu.memory_space<vmem>>, vector<4x8x128xf32>
    tpu.vector_store %arg4[%c0_9, %c0_10, %c0_11], %5 {strides = array<i32>} : memref<4x28x128xf32, #tpu.memory_space<vmem>>, vector<4x8x128xf32>,
    %c0_12 = arith.constant 0 : index
    %c4 = arith.constant 4 : index
    %c0_13 = arith.constant 0 : index
    %7 = vector.load %arg4[%c0_12, %c4, %c0_13] : memref<4x28x128xf32, #tpu.memory_space<vmem>>, vector<4x8x128xf32>
    %c0_14 = arith.constant 0 : index
    %c1 = arith.constant 1 : index
    %c0_15 = arith.constant 0 : index
    %c0_16 = arith.constant 0 : index
    %8 = vector.load %arg2[%c0_14, %c1, %c0_15, %c0_16] : memref<4x6x8x128xf32, #tpu.memory_space<vmem>>, vector<4x1x8x128xf32>
    %9 = vector.shape_cast %8 : vector<4x1x8x128xf32> to vector<4x8x128xf32>
    %10 = arith.addf %7, %9 : vector<4x8x128xf32>
    %c0_17 = arith.constant 0 : index
    %c4_18 = arith.constant 4 : index
    %c0_19 = arith.constant 0 : index
    %11 = vector.load %arg4[%c0_17, %c4_18, %c0_19] : memref<4x28x128xf32, #tpu.memory_space<vmem>>, vector<4x8x128xf32>
    tpu.vector_store %arg4[%c0_17, %c4_18, %c0_19], %10 {strides = array<i32>} : memref<4x28x128xf32, #tpu.memory_space<vmem>>, vector<4x8x128xf32>,
    %c0_20 = arith.constant 0 : index
    %c8 = arith.constant 8 : index
    %c0_21 = arith.constant 0 : index
    %12 = vector.load %arg4[%c0_20, %c8, %c0_21] : memref<4x28x128xf32, #tpu.memory_space<vmem>>, vector<4x8x128xf32>
    %c0_22 = arith.constant 0 : index
    %c2 = arith.constant 2 : index
    %c0_23 = arith.constant 0 : index
    %c0_24 = arith.constant 0 : index
    %13 = vector.load %arg2[%c0_22, %c2, %c0_23, %c0_24] : memref<4x6x8x128xf32, #tpu.memory_space<vmem>>, vector<4x1x8x128xf32>
    %14 = vector.shape_cast %13 : vector<4x1x8x128xf32> to vector<4x8x128xf32>
    %15 = arith.addf %12, %14 : vector<4x8x128xf32>
    %c0_25 = arith.constant 0 : index
    %c8_26 = arith.constant 8 : index
    %c0_27 = arith.constant 0 : index
    %16 = vector.load %arg4[%c0_25, %c8_26, %c0_27] : memref<4x28x128xf32, #tpu.memory_space<vmem>>, vector<4x8x128xf32>
    tpu.vector_store %arg4[%c0_25, %c8_26, %c0_27], %15 {strides = array<i32>} : memref<4x28x128xf32, #tpu.memory_space<vmem>>, vector<4x8x128xf32>,
    %c0_28 = arith.constant 0 : index
    %c12 = arith.constant 12 : index
    %c0_29 = arith.constant 0 : index
    %17 = vector.load %arg4[%c0_28, %c12, %c0_29] : memref<4x28x128xf32, #tpu.memory_space<vmem>>, vector<4x8x128xf32>
    %c0_30 = arith.constant 0 : index
    %c3 = arith.constant 3 : index
    %c0_31 = arith.constant 0 : index
    %c0_32 = arith.constant 0 : index
    %18 = vector.load %arg2[%c0_30, %c3, %c0_31, %c0_32] : memref<4x6x8x128xf32, #tpu.memory_space<vmem>>, vector<4x1x8x128xf32>
    %19 = vector.shape_cast %18 : vector<4x1x8x128xf32> to vector<4x8x128xf32>
    %20 = arith.addf %17, %19 : vector<4x8x128xf32>
    %c0_33 = arith.constant 0 : index
    %c12_34 = arith.constant 12 : index
    %c0_35 = arith.constant 0 : index
    %21 = vector.load %arg4[%c0_33, %c12_34, %c0_35] : memref<4x28x128xf32, #tpu.memory_space<vmem>>, vector<4x8x128xf32>
    tpu.vector_store %arg4[%c0_33, %c12_34, %c0_35], %20 {strides = array<i32>} : memref<4x28x128xf32, #tpu.memory_space<vmem>>, vector<4x8x128xf32>,
    %c0_36 = arith.constant 0 : index
    %c16 = arith.constant 16 : index
    %c0_37 = arith.constant 0 : index
    %22 = vector.load %arg4[%c0_36, %c16, %c0_37] : memref<4x28x128xf32, #tpu.memory_space<vmem>>, vector<4x8x128xf32>
    %c0_38 = arith.constant 0 : index
    %c4_39 = arith.constant 4 : index
    %c0_40 = arith.constant 0 : index
    %c0_41 = arith.constant 0 : index
    %23 = vector.load %arg2[%c0_38, %c4_39, %c0_40, %c0_41] : memref<4x6x8x128xf32, #tpu.memory_space<vmem>>, vector<4x1x8x128xf32>
    %24 = vector.shape_cast %23 : vector<4x1x8x128xf32> to vector<4x8x128xf32>
    %25 = arith.addf %22, %24 : vector<4x8x128xf32>
    %c0_42 = arith.constant 0 : index
    %c16_43 = arith.constant 16 : index
    %c0_44 = arith.constant 0 : index
    %26 = vector.load %arg4[%c0_42, %c16_43, %c0_44] : memref<4x28x128xf32, #tpu.memory_space<vmem>>, vector<4x8x128xf32>
    tpu.vector_store %arg4[%c0_42, %c16_43, %c0_44], %25 {strides = array<i32>} : memref<4x28x128xf32, #tpu.memory_space<vmem>>, vector<4x8x128xf32>,
    %c0_45 = arith.constant 0 : index
    %c20 = arith.constant 20 : index
    %c0_46 = arith.constant 0 : index
    %27 = vector.load %arg4[%c0_45, %c20, %c0_46] : memref<4x28x128xf32, #tpu.memory_space<vmem>>, vector<4x8x128xf32>
    %c0_47 = arith.constant 0 : index
    %c5 = arith.constant 5 : index
    %c0_48 = arith.constant 0 : index
    %c0_49 = arith.constant 0 : index
    %28 = vector.load %arg2[%c0_47, %c5, %c0_48, %c0_49] : memref<4x6x8x128xf32, #tpu.memory_space<vmem>>, vector<4x1x8x128xf32>
    %29 = vector.shape_cast %28 : vector<4x1x8x128xf32> to vector<4x8x128xf32>
    %30 = arith.addf %27, %29 : vector<4x8x128xf32>
    %c0_50 = arith.constant 0 : index
    %c20_51 = arith.constant 20 : index
    %c0_52 = arith.constant 0 : index
    %31 = vector.load %arg4[%c0_50, %c20_51, %c0_52] : memref<4x28x128xf32, #tpu.memory_space<vmem>>, vector<4x8x128xf32>
    tpu.vector_store %arg4[%c0_50, %c20_51, %c0_52], %30 {strides = array<i32>} : memref<4x28x128xf32, #tpu.memory_space<vmem>>, vector<4x8x128xf32>,
    %c0_53 = arith.constant 0 : index
    %c0_54 = arith.constant 0 : index
    %c0_55 = arith.constant 0 : index
    %32 = vector.load %arg4[%c0_53, %c0_54, %c0_55] : memref<4x28x128xf32, #tpu.memory_space<vmem>>, vector<4x28x128xf32>
    %c0_56 = arith.constant 0 : index
    %c0_57 = arith.constant 0 : index
    %33 = vector.load %arg1[%c0_56, %c0_57] : memref<28x1xf32, #tpu.memory_space<vmem>>, vector<28x1xf32>
    %34 = vector.shape_cast %33 : vector<28x1xf32> to vector<1x28x1xf32>
    %35 = vector.broadcast %34 : vector<1x28x1xf32> to vector<4x28x128xf32>
    %36 = arith.mulf %32, %35 : vector<4x28x128xf32>
    %c0_58 = arith.constant 0 : index
    %c0_59 = arith.constant 0 : index
    %c0_60 = arith.constant 0 : index
    %37 = vector.load %arg3[%c0_58, %c0_59, %c0_60] : memref<4x28x128xf32, #tpu.memory_space<vmem>>, vector<4x28x128xf32>
    tpu.vector_store %arg3[%c0_58, %c0_59, %c0_60], %36 {strides = array<i32>} : memref<4x28x128xf32, #tpu.memory_space<vmem>>, vector<4x28x128xf32>,
    return
  }
  func.func @transform_0(%arg0: i32) -> (i32, i32) {
    %c0_i32 = arith.constant 0 : i32
    %c0_i32_0 = arith.constant 0 : i32
    %c0_i32_1 = arith.constant 0 : i32
    return %c0_i32, %c0_i32_0 : i32, i32
  }
  func.func @transform_1(%arg0: i32) -> (i32, i32, i32, i32) {
    %c0_i32 = arith.constant 0 : i32
    %c0_i32_0 = arith.constant 0 : i32
    %c0_i32_1 = arith.constant 0 : i32
    %c0_i32_2 = arith.constant 0 : i32
    return %arg0, %c0_i32, %c0_i32_0, %c0_i32_1 : i32, i32, i32, i32
  }
  func.func @transform_2(%arg0: i32) -> (i32, i32, i32) {
    %c0_i32 = arith.constant 0 : i32
    %c0_i32_0 = arith.constant 0 : i32
    %c0_i32_1 = arith.constant 0 : i32
    return %arg0, %c0_i32, %c0_i32_0 : i32, i32, i32
  }
}

</mosaic_0001>

<bundles_post_ra>
// kernel: tpu_custom_call.1
= control target key start
LH: loop header
LB: loop body
LE: loop exit
PB: predicated region body
PF: predicated region fallthrough
CT: control target
= control target key end

     0   :  { %7 = vsyncpa [#allocation4], 0  ;;  %s749_s0 = inlined_call_operand.vmem [shape: f32[28,1], index: 0, kind: input, shape index: {}]   ;;  %s750_s1 = inlined_call_operand.hbm [shape: f32[8,6,8,128], index: 1, kind: input, shape index: {}]   ;;  %s751_s2 = inlined_call_operand.vmem [shape: f32[8,28,128], index: 2, kind: output, shape index: {}]  }
   0x1   :  { %9 = vsyncpa [#allocation4 + $0x1], 0  ;;  %s593_s9 = smov 0   ;;  %s595_s10 = smov 0  }
   0x2   :  { %s597_s11 = smov 0   ;;  %s599_s12 = smov 0  }
   0x3 LB: > { %s427_s13 = sadd.s32 4294967295, %s571_s12   ;;  %s613_s14 = sadd.s32 1, %s571_s12   ;;  %s571_s12 = sphi %s599_s12, %s760_s12   ;;  %s567_s11 = sphi %s597_s11, %s759_s11   ;;  %s563_s10 = sphi %s595_s10, %s758_s10   ;;  %s559_s9 = sphi %s593_s9, %s757_s9  }
   0x4   : > { %s40_s15 = ssub.s32 %s571_s12, %s613_s14  ;;  %s43_s16 = sadd.s32 1, %s567_s11 }
   0x5   : > { %p41_p0 = scmp.eq.s32.totalorder %s40_s15, 0  ;;  %p50_p1 = scmp.ne.s32.totalorder %s567_s11, %s563_s10 }
   0x6   : > { %p51_p2 = scmp.eq.s32.totalorder %s571_s12, 0  ;;  %p56_p3 = scmp.ne.s32.totalorder %s563_s10, %s559_s9 }
   0x7   : > { %s623_s17 = scalar_select %p41_p0, %s567_s11, %s43_s16  }
   0x8   : > { %p52_p4 = por %p51_p2, %p50_p1  ;;  %p57_p5 = scmp.eq.s32.totalorder %s427_s13, 0 }
   0x9   : > { %p470_p6 = scmp.lt.s32.totalorder %s571_s12, 2  ;;  %s109_s19 = sand.u32 1, %s567_s11  }
   0xa   : > { %p628_p7 = por %p57_p5, %p56_p3  ;;  %s461_s20 = smul.u32 192, %s109_s19 }
   0xb   : > { %s462_s21 = smul.u32 3072, %s571_s12  ;;  %p634_p8 = pnand %p470_p6, %p52_p4 }
   0xc   : > { %s753_s18 = scalar_select %p628_p7, 1, 0 }
   0xd   : > { %s641_s25 = scalar_lea.hbm %s750_s1, %s462_s21  ;;  %s113_s26 = scalar_lea.vmem [#allocation3], %s461_s20 }
   0xe   : > { %s121_s27 = sshll.u32 %s113_s26, 4  ;;  %s646_s28 = scalar_lea.sflag [#allocation4], %s109_s19  ;;  %s643_s27 = int_to_ptr.vmem [resolvable:$true] %s121_s27 }
   0xf   : > { %s509_s29 = scalar_lea.hbm %s641_s25, 3072  ;;  %p511_p11 = pneg %p634_p8 }
  0x10   : > { %p510_p10 = scmp.ne.s32.totalorder %s641_s25, %s509_s29  ;;  %s514_s4 = scalar_lea.hbm %s750_s1, 6144 }
  0x11   : > { %p515_p0 = scmp.lt.s32.totalorder %s641_s25, %s750_s1  ;;  %p516_p1 = scmp.lt.s32.totalorder %s514_s4, %s509_s29 }
  0x12   : > { %p512_p12 = pnand %p511_p11, %p510_p10 }
  0x13   : > { %p517_p2 = por %p516_p1, %p515_p0 }
  0x14   : > { %p513_p13 = pneg %p512_p12 }
  0x16   : > { %p518_p3 = pnand %p517_p2, %p513_p13 }
  0x18   : > { %521 = shalt.err (!%p518_p3)
}
  0x19   : > { %s522_s7 = scalar_lea.vmem %s643_s27, 3072  ;;  %s573_s8 = smov [#allocation3]  }
  0x1a   : > { %p523_p4 = scmp.ne.s32.totalorder %s643_s27, %s522_s7  ;;  %s527_s9 = sshll.u32 %s573_s8, 4  ;;  %s528_s9 = int_to_ptr.vmem [resolvable:$false] %s527_s9 }
  0x1b   : > { %s529_s15 = scalar_lea.vmem %s528_s9, 6144  ;;  %p530_p10 = scmp.lt.s32.totalorder %s643_s27, %s528_s9 }
  0x1c   : > { %p525_p5 = pnand %p523_p4, %p511_p11  ;;  %p531_p12 = scmp.lt.s32.totalorder %s529_s15, %s522_s7 }
  0x1e   : > { %p526_p6 = pneg %p525_p5  ;;  %p532_p9 = por %p531_p12, %p530_p10 }
  0x20   : > { %p533_p7 = pnand %p532_p9, %p526_p6 }
  0x22   : > { %536 = shalt.err (!%p533_p7)
}
  0x23   : > { %s574_s16 = smov 128   ;;  %s575_s19 = smov 8  }
  0x24   : > { %469 = dma.hbm_to_vmem [thread:$0]  (!%p634_p8), %s641_s25, 3072, %s643_s27, %s646_s28, %s574_s16, %s574_s16, %s575_s19  }
  0x25   : > { %p129_p11 = scmp.lt.s32.totalorder %s571_s12, 3  ;;  %p755_p13 = scmp.ge.s32.totalorder %s571_s12, 1 }
  0x27   : > { %p130_p0 = pnand %p755_p13, %p129_p11 }
  0x28   : > { %s135_s20 = sand.u32 (!%p130_p0), 1, %s563_s10   ;;  %p756_p7 = scmp.ne.s32.totalorder (!%p130_p0), %s753_s18, 0 }
  0x29   : > { %133 = sbr.rel (%p130_p0) target bundleno = 183 (0xb7), region = 28  ;;  %s136_s23 = scalar_lea.sflag (!%p130_p0), [#allocation4], %s135_s20 }
  0x2a   : > { %s463_s21 = smul.u32 (!%p130_p0), 192, %s135_s20 }
  0x2c   : > { %s671_s24 = scalar_lea.vmem (!%p130_p0), [#allocation3], %s463_s21 }
  0x2e   : > { %554 = dma.done.wait (%p756_p7), %s136_s23, 3072  }
  0x2f   : > { %556 = vsyncadd (%p756_p7), %s136_s23, 4294964224  ;;  %v576_v0 = vmov 0   ;;  %v577_v1 = vmov 0.0   ;;  %v304_v2 = vld [vmem:[%s749_s0 + $0x10] sm:$0xff]  ;;  %v302_v3 = vld [vmem:[%s749_s0] sm:$0xff]  ;;  %s435_s3 = sshll.u32 %s427_s13, 2 }
  0x30   : > { %508 = vset.pattern.permute.xlu1 %v576_v0  ;;  %507 = vset.pattern.permute.xlu0 %v576_v0  ;;  %170 = vst [vmem:[#allocation2 + $0x8] sm:$0xff] %v577_v1  ;;  %171 = vst [vmem:[#allocation2 + $0x10] sm:$0xff] %v577_v1  ;;  %v305_v4 = vld [vmem:[%s749_s0 + $0x18] sm:$0xf]  ;;  %v189_v5 = vld [vmem:[%s671_s24] sm:$0xff]  ;;  %p163_p8 = scmp.lt.s32.totalorder %s435_s3, 7 }
  0x31   : > { %172 = vst [vmem:[#allocation2 + $0x18] sm:$0xf] %v577_v1  ;;  %174 = vst [vmem:[#allocation2 + $0x28] sm:$0xff] %v577_v1  ;;  %318 = vperm.xlu1 %508, %v304_v2   ;;  %308 = vperm.xlu0 %507, %v302_v3   ;;  %v190_v6 = vld [vmem:[%s671_s24 + $0x30] sm:$0xff]  ;;  %v303_v7 = vld [vmem:[%s749_s0 + $0x8] sm:$0xff] }
  0x32   : > { %175 = vst [vmem:[#allocation2 + $0x30] sm:$0xff] %v577_v1  ;;  %176 = vst [vmem:[#allocation2 + $0x38] sm:$0xf] %v577_v1  ;;  %v191_v8 = vld [vmem:[%s671_s24 + $0x60] sm:$0xff]  ;;  %v192_v9 = vld [vmem:[%s671_s24 + $0x90] sm:$0xff]  ;;  %s762_s3 = smov (!%p163_p8, %s435_s3), 7 }
  0x33   : > { %178 = vst [vmem:[#allocation2 + $0x48] sm:$0xff] %v577_v1  ;;  %179 = vst [vmem:[#allocation2 + $0x50] sm:$0xff] %v577_v1  ;;  %v438_v10 = vld [vmem:[%s671_s24 + $0x8] sm:$0xff]  ;;  %v439_v11 = vld [vmem:[%s671_s24 + $0x38] sm:$0xff]  ;;  %s460_s4 = sshll.u32 %s762_s3, 5 }
  0x34   : > { %180 = vst [vmem:[#allocation2 + $0x58] sm:$0xf] %v577_v1  ;;  %182 = vst [vmem:[#allocation2 + $0x68] sm:$0xff] %v577_v1  ;;  %v440_v12 = vld [vmem:[%s671_s24 + $0x68] sm:$0xff]  ;;  %v441_v13 = vld [vmem:[%s671_s24 + $0x98] sm:$0xff]  ;;  %s718_s7 = scalar_lea.vmem %s751_s2, %s460_s4 }
  0x35   : > { %183 = vst [vmem:[#allocation2 + $0x70] sm:$0xff] %v577_v1  ;;  %184 = vst [vmem:[#allocation2 + $0x78] sm:$0xf] %v577_v1  ;;  %323 = vperm.xlu1 %508, %v305_v4   ;;  %313 = vperm.xlu0 %507, %v303_v7   ;;  %v442_v22 = vld [vmem:[%s671_s24 + $0x10] sm:$0xff]  ;;  %v443_v23 = vld [vmem:[%s671_s24 + $0x40] sm:$0xff] }
  0x36   : > { %197 = vst [vmem:[#allocation2] sm:$0xff] %v189_v5  ;;  %198 = vst [vmem:[#allocation2 + $0x20] sm:$0xff] %v190_v6  ;;  %v444_v24 = vld [vmem:[%s671_s24 + $0x70] sm:$0xff]  ;;  %v445_v25 = vld [vmem:[%s671_s24 + $0xa0] sm:$0xff] }
  0x37   : > { %199 = vst [vmem:[#allocation2 + $0x40] sm:$0xff] %v191_v8  ;;  %200 = vst [vmem:[#allocation2 + $0x60] sm:$0xff] %v192_v9  ;;  %v446_v34 = vld [vmem:[%s671_s24 + $0x18] sm:$0xff]  ;;  %v447_v35 = vld [vmem:[%s671_s24 + $0x48] sm:$0xff] }
  0x38   : > { %v448_v36 = vld [vmem:[%s671_s24 + $0x78] sm:$0xff]  ;;  %v449_v37 = vld [vmem:[%s671_s24 + $0xa8] sm:$0xff]  ;;  %v450_v46 = vld [vmem:[%s671_s24 + $0x20] sm:$0xff] }
  0x39   : > { %v451_v47 = vld [vmem:[%s671_s24 + $0x50] sm:$0xff]  ;;  %v452_v48 = vld [vmem:[%s671_s24 + $0x80] sm:$0xff]  ;;  %v454_v58 = vld [vmem:[%s671_s24 + $0x28] sm:$0xff] }
  0x3a   : > { %v453_v49 = vld [vmem:[%s671_s24 + $0xb0] sm:$0xff]  ;;  %v455_v59 = vld [vmem:[%s671_s24 + $0x58] sm:$0xff]  ;;  %v456_v60 = vld [vmem:[%s671_s24 + $0x88] sm:$0xff] }
  0x3b   : > { %v457_v61 = vld [vmem:[%s671_s24 + $0xb8] sm:$0xff] }
  0x3d   : > { %v201_v14 = vld [vmem:[#allocation2 + $0x4] sm:$0xff] }
  0x3e   : > { %v202_v15 = vld [vmem:[#allocation2 + $0x24] sm:$0xff]  ;;  %v210_v18 = vadd.f32 %v438_v10, %v201_v14 }
  0x3f   : > { %v203_v16 = vld [vmem:[#allocation2 + $0x44] sm:$0xff]  ;;  %v211_v19 = vadd.f32 %v439_v11, %v202_v15 }
  0x40   : > { %v204_v17 = vld [vmem:[#allocation2 + $0x64] sm:$0xff]  ;;  %v212_v20 = vadd.f32 %v440_v12, %v203_v16  ;;  %214 = vst [vmem:[#allocation2 + $0x4] sm:$0xff] %v210_v18 }
  0x41   : > { %v213_v21 = vadd.f32 %v441_v13, %v204_v17  ;;  %215 = vst [vmem:[#allocation2 + $0x24] sm:$0xff] %v211_v19 }
  0x42   : > { %216 = vst [vmem:[#allocation2 + $0x44] sm:$0xff] %v212_v20 }
  0x43   : > { %217 = vst [vmem:[#allocation2 + $0x64] sm:$0xff] %v213_v21 }
  0x47   : > { %v218_v26 = vld [vmem:[#allocation2 + $0x8] sm:$0xff]  ;;  %v286_v8 = vld [vmem:[#allocation2] sm:$0xff] }
  0x48   : > { %v219_v27 = vld [vmem:[#allocation2 + $0x28] sm:$0xff]  ;;  %v227_v30 = vadd.f32 %v442_v22, %v218_v26  ;;  %v290_v9 = vld [vmem:[#allocation2 + $0x20] sm:$0xff] }
  0x49   : > { %v220_v28 = vld [vmem:[#allocation2 + $0x48] sm:$0xff]  ;;  %v228_v31 = vadd.f32 %v443_v23, %v219_v27  ;;  %v294_v16 = vld [vmem:[#allocation2 + $0x40] sm:$0xff] }
  0x4a   : > { %v221_v29 = vld [vmem:[#allocation2 + $0x68] sm:$0xff]  ;;  %v229_v32 = vadd.f32 %v444_v24, %v220_v28  ;;  %231 = vst [vmem:[#allocation2 + $0x8] sm:$0xff] %v227_v30  ;;  %v298_v17 = vld [vmem:[#allocation2 + $0x60] sm:$0xff] }
  0x4b   : > { %v230_v33 = vadd.f32 %v445_v25, %v221_v29  ;;  %232 = vst [vmem:[#allocation2 + $0x28] sm:$0xff] %v228_v31 }
  0x4c   : > { %233 = vst [vmem:[#allocation2 + $0x48] sm:$0xff] %v229_v32 }
  0x4d   : > { %234 = vst [vmem:[#allocation2 + $0x68] sm:$0xff] %v230_v33 }
  0x51   : > { %v235_v38 = vld [vmem:[#allocation2 + $0xc] sm:$0xff] }
  0x52   : > { %v236_v39 = vld [vmem:[#allocation2 + $0x2c] sm:$0xff]  ;;  %v244_v42 = vadd.f32 %v446_v34, %v235_v38 }
  0x53   : > { %v237_v40 = vld [vmem:[#allocation2 + $0x4c] sm:$0xff]  ;;  %v245_v43 = vadd.f32 %v447_v35, %v236_v39 }
  0x54   : > { %v238_v41 = vld [vmem:[#allocation2 + $0x6c] sm:$0xff]  ;;  %v246_v44 = vadd.f32 %v448_v36, %v237_v40  ;;  %248 = vst [vmem:[#allocation2 + $0xc] sm:$0xff] %v244_v42 }
  0x55   : > { %v247_v45 = vadd.f32 %v449_v37, %v238_v41  ;;  %249 = vst [vmem:[#allocation2 + $0x2c] sm:$0xff] %v245_v43 }
  0x56   : > { %250 = vst [vmem:[#allocation2 + $0x4c] sm:$0xff] %v246_v44 }
  0x57   : > { %251 = vst [vmem:[#allocation2 + $0x6c] sm:$0xff] %v247_v45 }
  0x5b   : > { %v252_v50 = vld [vmem:[#allocation2 + $0x10] sm:$0xff]  ;;  %v287_v23 = vld [vmem:[#allocation2 + $0x8] sm:$0xff] }
  0x5c   : > { %v253_v51 = vld [vmem:[#allocation2 + $0x30] sm:$0xff]  ;;  %v261_v54 = vadd.f32 %v450_v46, %v252_v50  ;;  %v291_v24 = vld [vmem:[#allocation2 + $0x28] sm:$0xff] }
  0x5d   : > { %v254_v52 = vld [vmem:[#allocation2 + $0x50] sm:$0xff]  ;;  %v262_v55 = vadd.f32 %v451_v47, %v253_v51  ;;  %v295_v34 = vld [vmem:[#allocation2 + $0x48] sm:$0xff] }
  0x5e   : > { %v255_v53 = vld [vmem:[#allocation2 + $0x70] sm:$0xff]  ;;  %v263_v56 = vadd.f32 %v452_v48, %v254_v52  ;;  %265 = vst [vmem:[#allocation2 + $0x10] sm:$0xff] %v261_v54  ;;  %v299_v35 = vld [vmem:[#allocation2 + $0x68] sm:$0xff] }
  0x5f   : > { %v264_v57 = vadd.f32 %v453_v49, %v255_v53  ;;  %266 = vst [vmem:[#allocation2 + $0x30] sm:$0xff] %v262_v55 }
  0x60   : > { %267 = vst [vmem:[#allocation2 + $0x50] sm:$0xff] %v263_v56 }
  0x61   : > { %268 = vst [vmem:[#allocation2 + $0x70] sm:$0xff] %v264_v57 }
  0x65   : > { %v269_v62 = vld [vmem:[#allocation2 + $0x14] sm:$0xff] }
  0x66   : > { %v270_v63 = vld [vmem:[#allocation2 + $0x34] sm:$0xff]  ;;  %v278_v2 = vadd.f32 %v454_v58, %v269_v62 }
  0x67   : > { %v271_v0 = vld [vmem:[#allocation2 + $0x54] sm:$0xff]  ;;  %v279_v3 = vadd.f32 %v455_v59, %v270_v63 }
  0x68   : > { %v272_v1 = vld [vmem:[#allocation2 + $0x74] sm:$0xff]  ;;  %v280_v4 = vadd.f32 %v456_v60, %v271_v0  ;;  %282 = vst [vmem:[#allocation2 + $0x14] sm:$0xff] %v278_v2 }
  0x69   : > { %v281_v5 = vadd.f32 %v457_v61, %v272_v1  ;;  %283 = vst [vmem:[#allocation2 + $0x34] sm:$0xff] %v279_v3 }
  0x6a   : > { %284 = vst [vmem:[#allocation2 + $0x54] sm:$0xff] %v280_v4 }
  0x6b   : > { %285 = vst [vmem:[#allocation2 + $0x74] sm:$0xff] %v281_v5 }
  0x6f   : > { %v288_v6 = vld [vmem:[#allocation2 + $0x10] sm:$0xff]  ;;  %v289_v20 = vld [vmem:[#allocation2 + $0x18] sm:$0xf] }
  0x70   : > { %v292_v7 = vld [vmem:[#allocation2 + $0x30] sm:$0xff]  ;;  %v293_v21 = vld [vmem:[#allocation2 + $0x38] sm:$0xf] }
  0x71   : > { %v296_v11 = vld [vmem:[#allocation2 + $0x50] sm:$0xff]  ;;  %v297_v28 = vld [vmem:[#allocation2 + $0x58] sm:$0xf] }
  0x72   : > { %v300_v13 = vld [vmem:[#allocation2 + $0x70] sm:$0xff]  ;;  %v301_v31 = vld [vmem:[#allocation2 + $0x78] sm:$0xf] }
  0xac   : > { %v319_v10 = vpop.permute.xlu1 %318  ;;  %v309_v12 = vpop.permute.xlu0 %308 }
  0xad   : > { %v328_v14 = vmul.f32 %v319_v10, %v288_v6  ;;  %v332_v15 = vmul.f32 %v319_v10, %v292_v7  ;;  %v326_v18 = vmul.f32 %v309_v12, %v286_v8  ;;  %v330_v19 = vmul.f32 %v309_v12, %v290_v9 }
  0xae   : > { %v336_v22 = vmul.f32 %v319_v10, %v296_v11  ;;  %v340_v25 = vmul.f32 %v319_v10, %v300_v13  ;;  %v334_v26 = vmul.f32 %v309_v12, %v294_v16  ;;  %v338_v30 = vmul.f32 %v309_v12, %v298_v17 }
  0xaf   : > { %344 = vst [vmem:[%s718_s7 + $0x10] sm:$0xff] %v328_v14  ;;  %348 = vst [vmem:[%s718_s7 + $0x30] sm:$0xff] %v332_v15 }
  0xb0   : > { %342 = vst [vmem:[%s718_s7] sm:$0xff] %v326_v18  ;;  %v324_v27 = vpop.permute.xlu1 %323  ;;  %v314_v29 = vpop.permute.xlu0 %313  ;;  %352 = vst [vmem:[%s718_s7 + $0x50] sm:$0xff] %v336_v22 }
  0xb1   : > { %346 = vst [vmem:[%s718_s7 + $0x20] sm:$0xff] %v330_v19  ;;  %v329_v32 = vmul.f32 %v324_v27, %v289_v20  ;;  %v333_v33 = vmul.f32 %v324_v27, %v293_v21  ;;  %356 = vst [vmem:[%s718_s7 + $0x70] sm:$0xff] %v340_v25  ;;  %v327_v36 = vmul.f32 %v314_v29, %v287_v23 }
  0xb2   : > { %350 = vst [vmem:[%s718_s7 + $0x40] sm:$0xff] %v334_v26  ;;  %v331_v37 = vmul.f32 %v314_v29, %v291_v24  ;;  %354 = vst [vmem:[%s718_s7 + $0x60] sm:$0xff] %v338_v30  ;;  %v337_v38 = vmul.f32 %v324_v27, %v297_v28  ;;  %v341_v39 = vmul.f32 %v324_v27, %v301_v31 }
  0xb3   : > { %345 = vst [vmem:[%s718_s7 + $0x18] sm:$0xf] %v329_v32  ;;  %349 = vst [vmem:[%s718_s7 + $0x38] sm:$0xf] %v333_v33  ;;  %v335_v40 = vmul.f32 %v314_v29, %v295_v34  ;;  %v339_v41 = vmul.f32 %v314_v29, %v299_v35 }
  0xb4   : > { %343 = vst [vmem:[%s718_s7 + $0x8] sm:$0xff] %v327_v36  ;;  %353 = vst [vmem:[%s718_s7 + $0x58] sm:$0xf] %v337_v38 }
  0xb5   : > { %347 = vst [vmem:[%s718_s7 + $0x28] sm:$0xff] %v331_v37  ;;  %357 = vst [vmem:[%s718_s7 + $0x78] sm:$0xf] %v341_v39 }
  0xb6   : > { %351 = vst [vmem:[%s718_s7 + $0x48] sm:$0xff] %v335_v40  ;;  %355 = vst [vmem:[%s718_s7 + $0x68] sm:$0xff] %v339_v41 }
  0xb7 PF: > { %p12_p9 = scmp.ge.s32.totalorder %s613_s14, 4   ;;  %s757_s9 = smov %s563_s10 }
  0xb8   : > { %s758_s10 = smov %s567_s11  ;;  %s759_s11 = smov %s623_s17 }
  0xb9   : > { %s760_s12 = smov %s613_s14  ;;  %14 = sbr.rel (!%p12_p9) target bundleno = 3 (0x3), region = 73 }
  0xbe   :  { %382 = vsyncpa [#allocation4], 1 }
  0xbf   :  { %384 = vsyncpa [#allocation4 + $0x1], 1 }

</bundles_post_ra>
